<compile_context>
chip_gen: v7x
topology: tpu7x:2x2x1
jax: 0.10.0
libtpu: 0.0.40
codegen_flags: <defaults>
</compile_context>

<pallas_src>
import functools

import numpy as np
import jax
import jax.numpy as jnp
from jax.experimental import pallas as pl
from jax.experimental.pallas import tpu as pltpu


def _psi_kernel(x_ref, p_ref, o_ref, *, bl, w, new_w, cw):
    # x_ref: (tr, bl*w)          lane index = i*w + nw*bl + j
    # p_ref: (bl, cw*bl, cw)     one-hot: P[j, m*bl + j, m] = 1
    # o_ref: (bl*bl, tr, new_w)  plane index = i*bl + j
    n_chunks = -(-new_w // cw)
    for i in range(bl):                                   # bl is small (2..4): unrolled
        for q in range(n_chunks):
            c0 = q * cw                                   # 128-aligned chunk start
            c = min(cw, new_w - c0)                       # static; < cw only on the tail
            band = x_ref[:, i * w + c0 * bl: i * w + (c0 + c) * bl]   # (tr, c*bl)
            for j in range(bl):
                pj = p_ref[j]                             # (cw*bl, cw)
                if c < cw:
                    pj = pj[:c * bl, :c]                  # tail chunk selector
                y = jnp.dot(band, pj, preferred_element_type=jnp.float32)
                o_ref[i * bl + j, :, c0:c0 + c] = y.astype(o_ref.dtype)


def _round_up(x, m):
    return -(-x // m) * m


def _vmem_limit_and_budget():
    """Per-generation scoped-VMEM limit and the tile budget used for sizing."""
    try:
        cap = int(pltpu.get_tpu_info().vmem_capacity_bytes)
        if cap <= 0:
            raise ValueError
    except Exception:
        cap = 64 * 1024 * 1024                 # conservative (v7x-sized) default
    limit = min(int(cap * 0.65), 96 * 1024 * 1024)
    budget = int(limit * 0.85)                 # headroom for Mosaic scratch / vregs
    return limit, budget


def _choose_row_tile(bs, R, bl, w, new_w, cw, itemsize, budget_bytes, row_align,
                     min_grid=4):
    """Largest row tile whose double-buffered VMEM footprint fits the budget,
    capped so the (parallel) grid keeps >= min_grid steps when possible."""
    lanes_in = _round_up(bl * w, 128)
    lanes_out = _round_up(new_w, 128)
    p_bytes = bl * _round_up(cw * bl, 8) * _round_up(cw, 128) * itemsize
    # double-buffered in/out tiles + f32 matmul result / cast copy per row (rough)
    per_row = 2 * (lanes_in + bl * bl * lanes_out) * itemsize + 2 * _round_up(cw, 128) * 4
    avail = budget_bytes - 2 * p_bytes
    if avail < per_row * row_align:
        return None                            # even the minimal tile does not fit
    tr_budget = avail // per_row
    per_batch_steps = -(-min_grid // bs)       # ceil(min_grid / bs)
    tr_par = -(-R // per_batch_steps)          # ceil(R / per_batch_steps)
    tr = min(int(tr_budget), tr_par, _round_up(R, row_align))
    tr = max(row_align, (tr // row_align) * row_align)
    return tr


def psi_reference(x, block_size):
    # Pure-JAX/XLA reference mirroring the PyTorch forward exactly.
    bl = block_size
    bs, d, h, w = x.shape
    new_h, new_w = h // bl, w // bl
    y = x.reshape(bs, d, new_h, bl, new_w, bl)
    y = jnp.transpose(y, (0, 3, 5, 1, 2, 4))
    return y.reshape(bs, d * bl * bl, new_h, new_w)


def psi_forward(x, block_size, *, force_pallas=False):
    bl = int(block_size)
    bs, d, h, w = x.shape
    assert h % bl == 0 and w % bl == 0, "spatial dims must be divisible by block_size"
    if bl == 1:
        return x
    new_h, new_w = h // bl, w // bl
    d_out = d * bl * bl

    if x.dtype not in (jnp.float32, jnp.bfloat16):
        # TODO(synk): non-float dtypes take the XLA reshape/transpose path (the one-hot
        # MXU permutation path is only used for float inputs).
        return psi_reference(x, bl)
    if x.size < (1 << 17) and not force_pallas:
        # Tiny tensors: kernel launch + grid-step overhead dominates; XLA is faster.
        return psi_reference(x, bl)

    R = d * new_h                              # rows of the (bs, R, bl*w) view
    cw = min(128, new_w)                       # output-column chunk width
    cb = cw * bl                               # matching input band width
    row_align = 16 if x.dtype == jnp.bfloat16 else 8

    vmem_limit, budget = _vmem_limit_and_budget()
    tr = _choose_row_tile(bs, R, bl, w, new_w, cw, x.dtype.itemsize, budget, row_align)
    if tr is None:
        if not force_pallas:
            return psi_reference(x, bl)
        tr = row_align

    # Free view: lane index i*w + nw*bl + j holds in[b, c, nh*bl + i, nw*bl + j].
    x2 = x.reshape(bs, R, bl * w)

    # Small per-j one-hot column selectors, built once on the host:
    #   P[j, m*bl + j, m] = 1  (output column m of plane j pulls source lane m*bl + j).
    m = np.arange(cw)
    p_np = np.zeros((bl, cb, cw), dtype=np.float32)
    for j in range(bl):
        p_np[j, m * bl + j, m] = 1.0
    p = jnp.asarray(p_np, dtype=x.dtype)

    nr = pl.cdiv(R, tr)
    grid = (bs, nr)

    n_full, tail = divmod(new_w, cw)
    macs = bs * R * bl * bl * (n_full * cb * cw + (tail * bl) * tail)
    cost = pl.CostEstimate(
        flops=int(2 * macs),
        transcendentals=0,
        bytes_accessed=int(2 * x.size * x.dtype.itemsize + p.size * p.dtype.itemsize))

    kernel = functools.partial(_psi_kernel, bl=bl, w=w, new_w=new_w, cw=cw)
    out_p = pl.pallas_call(
        kernel,
        out_shape=jax.ShapeDtypeStruct((bs, bl * bl, R, new_w), x.dtype),
        grid=grid,
        in_specs=[
            pl.BlockSpec((None, tr, bl * w), lambda b, rt: (b, rt, 0)),
            pl.BlockSpec((bl, cb, cw), lambda b, rt: (0, 0, 0)),
        ],
        out_specs=pl.BlockSpec((None, bl * bl, tr, new_w),
                               lambda b, rt: (b, 0, rt, 0)),
        compiler_params=pltpu.CompilerParams(
            dimension_semantics=("parallel", "parallel"),
            vmem_limit_bytes=int(vmem_limit)),
        cost_estimate=cost,
    )(x2, p)

    # Free views back to NCHW: (bs, bl^2, d, new_h, new_w) -> (bs, d*bl^2, new_h, new_w).
    return out_p.reshape(bs, d_out, new_h, new_w)


if __name__ == "__main__":
    block_size = 2
    key = jax.random.PRNGKey(0)

    # Case 1: small f32 (module's nominal shape); force the Pallas path.
    x1 = jax.random.normal(key, (2, 4, 16, 16), dtype=jnp.float32)
    o1 = jax.block_until_ready(psi_forward(x1, block_size, force_pallas=True))
    r1 = psi_reference(x1, block_size)
    assert o1.shape == (2, 16, 8, 8)
    assert jnp.allclose(o1, r1, atol=1e-6, rtol=1e-6)

    # Case 2: bf16, row count (36) not divisible by the row tile -> clipped tail block.
    x2 = jax.random.normal(jax.random.fold_in(key, 1), (2, 3, 24, 16), dtype=jnp.bfloat16)
    o2 = jax.block_until_ready(psi_forward(x2, block_size, force_pallas=True))
    r2 = psi_reference(x2, block_size)
    assert o2.shape == (2, 12, 12, 8)
    assert jnp.array_equal(o2, r2)

    # Case 3: wide image (new_w = 256) exercising the 128-wide chunked permutation path.
    x3 = jax.random.normal(jax.random.fold_in(key, 2), (1, 2, 8, 512), dtype=jnp.float32)
    o3 = jax.block_until_ready(psi_forward(x3, block_size, force_pallas=True))
    r3 = psi_reference(x3, block_size)
    assert o3.shape == (1, 8, 4, 256)
    assert jnp.allclose(o3, r3, atol=1e-6, rtol=1e-6)

    print("KERNEL_OK")
</pallas_src>

<mosaic_0001>
module attributes {stable_mosaic.version = 11 : i64} {
  func.func @_psi_kernel(%arg0: i32, %arg1: i32, %arg2: memref<1x16x32xf32, #tpu.memory_space<vmem>>, %arg3: memref<2x16x8xf32, #tpu.memory_space<vmem>>, %arg4: memref<1x4x16x8xf32, #tpu.memory_space<vmem>>) attributes {dimension_semantics = [#tpu.dimension_semantics<parallel>, #tpu.dimension_semantics<parallel>], iteration_bounds = array<i64: 2, 2>, scalar_prefetch = 0 : i64, scratch_operands = 0 : i64, tpu.core_type = #tpu.core_type<tc>, window_params = [{transform_indices = @transform_0, window_bounds = array<i64: 1, 16, 32>}, {pipeline_mode = #tpu.pipeline_mode<synchronous>, transform_indices = @transform_1, window_bounds = array<i64: 2, 16, 8>}, {transform_indices = @transform_2, window_bounds = array<i64: 1, 4, 16, 8>}]} {
    %c0 = arith.constant 0 : index
    %c0_0 = arith.constant 0 : index
    %c0_1 = arith.constant 0 : index
    %0 = vector.load %arg2[%c0, %c0_0, %c0_1] : memref<1x16x32xf32, #tpu.memory_space<vmem>>, vector<1x16x16xf32>
    %1 = vector.shape_cast %0 : vector<1x16x16xf32> to vector<16x16xf32>
    %c0_2 = arith.constant 0 : index
    %c0_3 = arith.constant 0 : index
    %c0_4 = arith.constant 0 : index
    %2 = vector.load %arg3[%c0_2, %c0_3, %c0_4] : memref<2x16x8xf32, #tpu.memory_space<vmem>>, vector<1x16x8xf32>
    %3 = vector.shape_cast %2 : vector<1x16x8xf32> to vector<16x8xf32>
    %cst = arith.constant dense<0.000000e+00> : vector<16x8xf32>
    %4 = tpu.matmul %1, %3, %cst {dimension_numbers = #tpu.dot_dimension_numbers<[1], [0], [0], [1], [0, 0, 1, 1], [], []>} : vector<16x16xf32>, vector<16x8xf32>, vector<16x8xf32> -> vector<16x8xf32>
    %c0_5 = arith.constant 0 : index
    %c0_6 = arith.constant 0 : index
    %c0_7 = arith.constant 0 : index
    %c0_8 = arith.constant 0 : index
    %5 = vector.load %arg4[%c0_5, %c0_6, %c0_7, %c0_8] : memref<1x4x16x8xf32, #tpu.memory_space<vmem>>, vector<1x1x16x8xf32>
    %6 = vector.shape_cast %5 : vector<1x1x16x8xf32> to vector<16x8xf32>
    %7 = vector.shape_cast %4 : vector<16x8xf32> to vector<1x1x16x8xf32>
    tpu.vector_store %arg4[%c0_5, %c0_6, %c0_7, %c0_8], %7 {strides = array<i32>} : memref<1x4x16x8xf32, #tpu.memory_space<vmem>>, vector<1x1x16x8xf32>,
    %c1 = arith.constant 1 : index
    %c0_9 = arith.constant 0 : index
    %c0_10 = arith.constant 0 : index
    %8 = vector.load %arg3[%c1, %c0_9, %c0_10] : memref<2x16x8xf32, #tpu.memory_space<vmem>>, vector<1x16x8xf32>
    %9 = vector.shape_cast %8 : vector<1x16x8xf32> to vector<16x8xf32>
    %cst_11 = arith.constant dense<0.000000e+00> : vector<16x8xf32>
    %10 = tpu.matmul %1, %9, %cst_11 {dimension_numbers = #tpu.dot_dimension_numbers<[1], [0], [0], [1], [0, 0, 1, 1], [], []>} : vector<16x16xf32>, vector<16x8xf32>, vector<16x8xf32> -> vector<16x8xf32>
    %c0_12 = arith.constant 0 : index
    %c1_13 = arith.constant 1 : index
    %c0_14 = arith.constant 0 : index
    %c0_15 = arith.constant 0 : index
    %11 = vector.load %arg4[%c0_12, %c1_13, %c0_14, %c0_15] : memref<1x4x16x8xf32, #tpu.memory_space<vmem>>, vector<1x1x16x8xf32>
    %12 = vector.shape_cast %11 : vector<1x1x16x8xf32> to vector<16x8xf32>
    %13 = vector.shape_cast %10 : vector<16x8xf32> to vector<1x1x16x8xf32>
    tpu.vector_store %arg4[%c0_12, %c1_13, %c0_14, %c0_15], %13 {strides = array<i32>} : memref<1x4x16x8xf32, #tpu.memory_space<vmem>>, vector<1x1x16x8xf32>,
    %c0_16 = arith.constant 0 : index
    %c0_17 = arith.constant 0 : index
    %c16 = arith.constant 16 : index
    %14 = vector.load %arg2[%c0_16, %c0_17, %c16] : memref<1x16x32xf32, #tpu.memory_space<vmem>>, vector<1x16x16xf32>
    %15 = vector.shape_cast %14 : vector<1x16x16xf32> to vector<16x16xf32>
    %c0_18 = arith.constant 0 : index
    %c0_19 = arith.constant 0 : index
    %c0_20 = arith.constant 0 : index
    %16 = vector.load %arg3[%c0_18, %c0_19, %c0_20] : memref<2x16x8xf32, #tpu.memory_space<vmem>>, vector<1x16x8xf32>
    %17 = vector.shape_cast %16 : vector<1x16x8xf32> to vector<16x8xf32>
    %cst_21 = arith.constant dense<0.000000e+00> : vector<16x8xf32>
    %18 = tpu.matmul %15, %17, %cst_21 {dimension_numbers = #tpu.dot_dimension_numbers<[1], [0], [0], [1], [0, 0, 1, 1], [], []>} : vector<16x16xf32>, vector<16x8xf32>, vector<16x8xf32> -> vector<16x8xf32>
    %c0_22 = arith.constant 0 : index
    %c2 = arith.constant 2 : index
    %c0_23 = arith.constant 0 : index
    %c0_24 = arith.constant 0 : index
    %19 = vector.load %arg4[%c0_22, %c2, %c0_23, %c0_24] : memref<1x4x16x8xf32, #tpu.memory_space<vmem>>, vector<1x1x16x8xf32>
    %20 = vector.shape_cast %19 : vector<1x1x16x8xf32> to vector<16x8xf32>
    %21 = vector.shape_cast %18 : vector<16x8xf32> to vector<1x1x16x8xf32>
    tpu.vector_store %arg4[%c0_22, %c2, %c0_23, %c0_24], %21 {strides = array<i32>} : memref<1x4x16x8xf32, #tpu.memory_space<vmem>>, vector<1x1x16x8xf32>,
    %c1_25 = arith.constant 1 : index
    %c0_26 = arith.constant 0 : index
    %c0_27 = arith.constant 0 : index
    %22 = vector.load %arg3[%c1_25, %c0_26, %c0_27] : memref<2x16x8xf32, #tpu.memory_space<vmem>>, vector<1x16x8xf32>
    %23 = vector.shape_cast %22 : vector<1x16x8xf32> to vector<16x8xf32>
    %cst_28 = arith.constant dense<0.000000e+00> : vector<16x8xf32>
    %24 = tpu.matmul %15, %23, %cst_28 {dimension_numbers = #tpu.dot_dimension_numbers<[1], [0], [0], [1], [0, 0, 1, 1], [], []>} : vector<16x16xf32>, vector<16x8xf32>, vector<16x8xf32> -> vector<16x8xf32>
    %c0_29 = arith.constant 0 : index
    %c3 = arith.constant 3 : index
    %c0_30 = arith.constant 0 : index
    %c0_31 = arith.constant 0 : index
    %25 = vector.load %arg4[%c0_29, %c3, %c0_30, %c0_31] : memref<1x4x16x8xf32, #tpu.memory_space<vmem>>, vector<1x1x16x8xf32>
    %26 = vector.shape_cast %25 : vector<1x1x16x8xf32> to vector<16x8xf32>
    %27 = vector.shape_cast %24 : vector<16x8xf32> to vector<1x1x16x8xf32>
    tpu.vector_store %arg4[%c0_29, %c3, %c0_30, %c0_31], %27 {strides = array<i32>} : memref<1x4x16x8xf32, #tpu.memory_space<vmem>>, vector<1x1x16x8xf32>,
    return
  }
  func.func @transform_0(%arg0: i32, %arg1: i32) -> (i32, i32, i32) {
    %c0_i32 = arith.constant 0 : i32
    %c0_i32_0 = arith.constant 0 : i32
    return %arg0, %arg1, %c0_i32 : i32, i32, i32
  }
  func.func @transform_1(%arg0: i32, %arg1: i32) -> (i32, i32, i32) {
    %c0_i32 = arith.constant 0 : i32
    %c0_i32_0 = arith.constant 0 : i32
    %c0_i32_1 = arith.constant 0 : i32
    %c0_i32_2 = arith.constant 0 : i32
    return %c0_i32, %c0_i32_0, %c0_i32_1 : i32, i32, i32
  }
  func.func @transform_2(%arg0: i32, %arg1: i32) -> (i32, i32, i32, i32) {
    %c0_i32 = arith.constant 0 : i32
    %c0_i32_0 = arith.constant 0 : i32
    %c0_i32_1 = arith.constant 0 : i32
    return %arg0, %c0_i32, %arg1, %c0_i32_0 : i32, i32, i32, i32
  }
}

</mosaic_0001>

<bundles_post_ra>
// kernel: tpu_custom_call.1
= control target key start
LH: loop header
LB: loop body
LE: loop exit
PB: predicated region body
PF: predicated region fallthrough
CT: control target
= control target key end

     0   :  { %7 = vsyncpa [#allocation3], 0  ;;  %s1151_s0 = inlined_call_operand.hbm [shape: f32[2,32,32], index: 0, kind: input, shape index: {}]   ;;  %s1152_s1 = inlined_call_operand.vmem [shape: f32[2,16,8], index: 1, kind: input, shape index: {}]   ;;  %s1153_s2 = inlined_call_operand.vmem [shape: f32[2,4,32,8], index: 2, kind: output, shape index: {}]  }
   0x1   :  { %9 = vsyncpa [#allocation3 + $0x1], 0  ;;  %s957_s9 = smov 0   ;;  %s959_s10 = smov 0  }
   0x2   :  { %s961_s11 = smov 0   ;;  %s963_s12 = smov 0  }
   0x3   :  { %s965_s13 = smov 0   ;;  %s967_s14 = smov 0  }
   0x4   :  { %s969_s15 = smov 0   ;;  %s971_s16 = smov 0  }
   0x5 LB: > { %s671_s17 = sadd.s32 4294967295, %s936_s16   ;;  %s24_s18 = sadd.s32 1, %s928_s14  ;;  %s936_s16 = sphi %s971_s16, %s15_s16   ;;  %s932_s15 = sphi %s969_s15, %s1166_s15   ;;  %s928_s14 = sphi %s967_s14, %s1165_s14   ;;  %s924_s13 = sphi %s965_s13, %s1164_s13   ;;  %s920_s12 = sphi %s963_s12, %s1163_s12   ;;  %s916_s11 = sphi %s961_s11, %s1162_s11   ;;  %s912_s10 = sphi %s959_s10, %s1161_s10   ;;  %s908_s9 = sphi %s957_s9, %s1160_s9  }
   0x6   : > { %p25_p0 = scmp.ge.s32.totalorder %s24_s18, 2  ;;  %s27_s19 = sadd.s32 1, %s932_s15 }
   0x7   : > { %s36_s20 = sadd.s32 1, %s916_s11  ;;  %p43_p1 = scmp.ne.s32.totalorder %s916_s11, %s912_s10 }
   0x8   : > { %s1168_s18 = smov (%p25_p0, %s24_s18), 0  ;;  %s1170_s19 = smov (!%p25_p0, %s27_s19), %s932_s15 }
   0x9   : > { %s32_s21 = ssub.s32 %s928_s14, %s1168_s18  ;;  %p44_p2 = scmp.eq.s32.totalorder %s936_s16, 0 }
   0xa   : > { %p29_p3 = scmp.ge.s32.totalorder %s1170_s19, 2  ;;  %p49_p4 = scmp.ne.s32.totalorder %s912_s10, %s908_s9 }
   0xb   : > { %p1011_p5 = por %p44_p2, %p43_p1  ;;  %p50_p6 = scmp.eq.s32.totalorder %s671_s17, 0 }
   0xc   : > { %s1172_s19 = smov (%p29_p3, %s1170_s19), 0  ;;  %p96_p8 = scmp.eq.s32.totalorder %s671_s17, 3 }
   0xd   : > { %p1017_p7 = por %p50_p6, %p49_p4  ;;  %s31_s24 = ssub.s32 %s932_s15, %s1172_s19 }
   0xe   : > { %s33_s25 = sor.u32 %s32_s21, %s31_s24  ;;  %p1026_p9 = por %p96_p8, %p43_p1 }
   0xf   : > { %p34_p10 = scmp.eq.s32.totalorder %s33_s25, 0  ;;  %p772_p11 = scmp.lt.s32.totalorder %s936_s16, 4 }
  0x10   : > { %s1156_s26 = scalar_select %p1026_p9, 1, 0 }
  0x11   : > { %s125_s27 = sand.u32 1, %s916_s11   ;;  %s676_s28 = sshll.u32 %s928_s14, 1 }
  0x12   : > { %s1034_s29 = scalar_select %p34_p10, %s916_s11, %s36_s20  }
  0x13   : > { %s675_s30 = sshll.u32 %s125_s27, 4  ;;  %s677_s3 = sshll.u32 %s932_s15, 2 }
  0x14   : > { %s135_s4 = sadd.s32 %s677_s3, %s676_s28  ;;  %s129_s5 = scalar_lea.vmem [#allocation2], %s675_s30 }
  0x15   : > { %s138_s6 = sshll.u32 %s129_s5, 4  ;;  %s678_s7 = sshll.u32 %s135_s4, 7  ;;  %s1037_s6 = int_to_ptr.vmem [resolvable:$true] %s138_s6 }
  0x16   : > { %s1042_s17 = scalar_lea.hbm %s1151_s0, %s678_s7  ;;  %p1046_p12 = pnand %p772_p11, %p1011_p5 }
  0x17   : > { %s1051_s21 = scalar_lea.sflag [#allocation3], %s125_s27  ;;  %s840_s24 = scalar_lea.hbm %s1042_s17, 256 }
  0x18   : > { %p841_p0 = scmp.ne.s32.totalorder %s1042_s17, %s840_s24  ;;  %p842_p1 = pneg %p1046_p12 }
  0x19   : > { %s845_s28 = scalar_lea.hbm %s1151_s0, 1024  ;;  %p846_p4 = scmp.lt.u32.totalorder %s1042_s17, %s1151_s0 }
  0x1a   : > { %p843_p2 = pnand %p842_p1, %p841_p0  ;;  %p847_p5 = scmp.lt.u32.totalorder %s845_s28, %s840_s24 }
  0x1b   : > { %p849_p8 = scmp.lt.u32.totalorder %s840_s24, %s1042_s17 }
  0x1c   : > { %p844_p3 = pneg %p843_p2  ;;  %p848_p6 = por %p847_p5, %p846_p4 }
  0x1e   : > { %p850_p10 = por %p849_p8, %p848_p6 }
  0x20   : > { %p851_p11 = pnand %p850_p10, %p844_p3 }
  0x22   : > { %854 = shalt.err (!%p851_p11)
}
  0x23   : > { %s855_s27 = scalar_lea.vmem %s1037_s6, 256  ;;  %s938_s4 = smov [#allocation2]  }
  0x24   : > { %p856_p0 = scmp.ne.s32.totalorder %s1037_s6, %s855_s27  ;;  %s860_s5 = sshll.u32 %s938_s4, 4  ;;  %s861_s5 = int_to_ptr.vmem [resolvable:$false] %s860_s5 }
  0x25   : > { %s862_s7 = scalar_lea.vmem %s861_s5, 512  ;;  %p863_p9 = scmp.lt.s32.totalorder %s1037_s6, %s861_s5 }
  0x26   : > { %p858_p2 = pnand %p856_p0, %p842_p1  ;;  %p864_p4 = scmp.lt.s32.totalorder %s862_s7, %s855_s27 }
  0x28   : > { %p859_p13 = pneg %p858_p2  ;;  %p865_p5 = por %p864_p4, %p863_p9 }
  0x2a   : > { %p866_p6 = pnand %p865_p5, %p859_p13 }
  0x2c   : > { %869 = shalt.err (!%p866_p6)
}
  0x2d   : > { %s939_s8 = smov 128   ;;  %s940_s9 = smov 8  }
  0x2e   : > { %771 = dma.hbm_to_vmem [thread:$0]  (!%p1046_p12), %s1042_s17, 256, %s1037_s6, %s1051_s21, %s939_s8, %s939_s8, %s940_s9  }
  0x2f   : > { %p146_p1 = scmp.lt.s32.totalorder %s936_s16, 5  ;;  %p1158_p3 = scmp.ge.s32.totalorder %s936_s16, 1 }
  0x31   : > { %p147_p8 = pnand %p1158_p3, %p146_p1 }
  0x32   : > { %s1083_s24 = sand.u32 (!%p147_p8), 1, %s912_s10  }
  0x33   : > { %150 = sbr.rel (%p147_p8) target bundleno = 401 (0x191), region = 28  ;;  %s680_s22 = sshll.u32 (!%p147_p8), %s1083_s24, 4 }
  0x34   : > { %s153_s25 = scalar_lea.sflag (!%p147_p8), [#allocation3], %s1083_s24  ;;  %s156_s28 = scalar_lea.vmem (!%p147_p8), [#allocation2], %s680_s22 }
  0x3a   : > { %903 = dma.done.wait (%p1017_p7), %s153_s25, 256  }
  0x3b   : > { %905 = vsyncadd (%p1017_p7), %s153_s25, 4294967040  ;;  %vm182_vm0 = vcmask 130048   ;;  %v348_v0 = vld [vmem:[%s156_s28] sm:$0xff]  ;;  %s941_s20 = smov 112   ;;  %v181_v2 = vld [vmem:[%s1152_s1 + $0x8] sm:$0xff]  ;;  %s681_s23 = sshll.u32 %s1083_s24, 6 }
  0x3c   : > { %v180_v1 = vld [vmem:[%s1152_s1] sm:$0xff]  ;;  %354 = vrot.lane.b32.xlu0 %v348_v0, %s941_s20  ;;  %v684_v3 = vld [vmem:[%s1152_s1 + $0x10] sm:$0xff]  ;;  %v685_v4 = vld [vmem:[%s1152_s1 + $0x18] sm:$0xff]  ;;  %726 = vmatprep.mubr.msk.f32.mxu0 %vm182_vm0, %v348_v0  ;;  %vm264_vm1 = vcmask 64512   ;;  %s175_s7 = scalar_lea.vmem [#allocation4], %s681_s23  ;;  %p1159_p7 = scmp.ne.s32.totalorder %s1156_s26, 0 }
  0x3d   : > { %v349_v5 = vld [vmem:[%s156_s28 + $0x8] sm:$0xff]  ;;  %v750_v6 = vpack.c.bf16 %v181_v2, %v180_v1  ;;  %v754_v7 = vpack.c.bf16 %v685_v4, %v684_v3  ;;  %733 = vmatprep.mubr.msk.f32.mxu1 %vm182_vm0, %v348_v0  ;;  %s701_s8 = sshll.u32 (%p1159_p7), %s920_s12, 1  ;;  %s702_s9 = sshll.u32 (%p1159_p7), %s924_s13, 4 }
  0x3e   : > { %s529_s24 = sadd.s32 (%p1159_p7), %s702_s9, %s701_s8 }
  0x3f   : > { %751 = vmatprep.subr.bf16.mxu0 %v750_v6  ;;  %755 = vmatprep.subr.bf16.mxu1 %v754_v7  ;;  %s703_s22 = sshll.u32 (%p1159_p7), %s529_s24, 3 }
  0x40   : > { %356 = vrot.lane.b32.xlu0 %v349_v5, %s941_s20  ;;  %753 = vmatpush3.bf16.msra.mxu0 %v750_v6  ;;  %s531_s6 = scalar_lea.vmem (%p1159_p7), %s1153_s2, %s703_s22 }
  0x41   : > { %757 = vmatpush3.bf16.msra.mxu1 %v754_v7  ;;  %759 = vmatprep.subr.bf16.mxu0 %v750_v6 }
  0x42   : > { %763 = vmatprep.subr.bf16.mxu1 %v754_v7 }
  0x43   : > { %727 = vmatmul.mubr.msk.f32.vlgmr.msra.gmra.mrb[0].mxu0 %vm182_vm0, %v349_v5 }
  0x44   : > { %734 = vmatmul.mubr.msk.f32.vlgmr.msra.gmra.mrb[0].mxu1 %vm182_vm0, %v349_v5  ;;  %761 = vmatpush3.bf16.msra.mxu0 %v750_v6 }
  0x45   : > { %765 = vmatpush3.bf16.msra.mxu1 %v754_v7 }
  0xae   : > { %v355_v8 = vpop.permute.xlu0 %354 }
  0xaf   : > { %740 = vmatprep.mubr.msk.f32.mxu0 %vm182_vm0, %v355_v8  ;;  %747 = vmatprep.mubr.msk.f32.mxu1 %vm182_vm0, %v355_v8 }
  0xb2   : > { %v357_v9 = vpop.permute.xlu0 %356 }
  0xb3   : > { %741 = vmatmul.mubr.msk.f32.vlgmr.msra.gmra.mrb[2].mxu0 %vm182_vm0, %v357_v9  ;;  %748 = vmatmul.mubr.msk.f32.vlgmr.msra.gmra.mrb[2].mxu1 %vm182_vm0, %v357_v9 }
 0x116   : > { %v728_v10 = vpop.f32.mrb[0].mxu0 }
 0x117   : > { %266 = vst.msk [vmem:[%s175_s7 + $0x8] sm:$0xff] %vm264_vm1, %v728_v10  ;;  %v735_v11 = vpop.f32.mrb[0].mxu1  ;;  %v255_v12 = vpop.f32.mrb[1].mxu0 }
 0x118   : > { %689 = vst.msk [vmem:[%s175_s7 + $0x18] sm:$0xff] %vm264_vm1, %v735_v11  ;;  %265 = vst.msk [vmem:[%s175_s7] sm:$0xff] %vm264_vm1, %v255_v12  ;;  %v336_v13 = vpop.f32.mrb[1].mxu1 }
 0x119   : > { %688 = vst.msk [vmem:[%s175_s7 + $0x10] sm:$0xff] %vm264_vm1, %v336_v13 }
 0x11e   : > { %v575_v19 = vld [vmem:[%s175_s7 + $0x8] sm:$0xff] (%p1159_p7) }
 0x11f   : > { %v573_v18 = vld [vmem:[%s175_s7] sm:$0xff] (%p1159_p7)  ;;  %v579_v21 = vld [vmem:[%s175_s7 + $0x18] sm:$0xff] (%p1159_p7)  ;;  %576 = vst [vmem:[%s531_s6 + $0x8] sm:$0xff] (%p1159_p7), %v575_v19 }
 0x120   : > { %v577_v20 = vld [vmem:[%s175_s7 + $0x10] sm:$0xff] (%p1159_p7)  ;;  %574 = vst [vmem:[%s531_s6] sm:$0xff] (%p1159_p7), %v573_v18  ;;  %580 = vst [vmem:[%s531_s6 + $0x28] sm:$0xff] (%p1159_p7), %v579_v21 }
 0x121   : > { %578 = vst [vmem:[%s531_s6 + $0x20] sm:$0xff] (%p1159_p7), %v577_v20 }
 0x182   : > { %526 = sbr.rel (!%p1159_p7) target bundleno = 401 (0x191), region = 36 }
 0x186   : > { %v742_v14 = vpop.f32.mrb[2].mxu0  ;;  %v749_v15 = vpop.f32.mrb[2].mxu1 }
 0x187   : > { %693 = vst.msk [vmem:[%s175_s7 + $0x28] sm:$0xff] %vm264_vm1, %v742_v14  ;;  %699 = vst.msk [vmem:[%s175_s7 + $0x38] sm:$0xff] %vm264_vm1, %v749_v15  ;;  %v428_v16 = vpop.f32.mrb[3].mxu0  ;;  %v508_v17 = vpop.f32.mrb[3].mxu1 }
 0x188   : > { %692 = vst.msk [vmem:[%s175_s7 + $0x20] sm:$0xff] %vm264_vm1, %v428_v16  ;;  %698 = vst.msk [vmem:[%s175_s7 + $0x30] sm:$0xff] %vm264_vm1, %v508_v17 }
 0x18e   : > { %v583_v23 = vld [vmem:[%s175_s7 + $0x28] sm:$0xff]  ;;  %v587_v25 = vld [vmem:[%s175_s7 + $0x38] sm:$0xff] }
 0x18f   : > { %v581_v22 = vld [vmem:[%s175_s7 + $0x20] sm:$0xff]  ;;  %v585_v24 = vld [vmem:[%s175_s7 + $0x30] sm:$0xff]  ;;  %584 = vst [vmem:[%s531_s6 + $0x48] sm:$0xff] %v583_v23  ;;  %588 = vst [vmem:[%s531_s6 + $0x68] sm:$0xff] %v587_v25 }
 0x190   : > { %582 = vst [vmem:[%s531_s6 + $0x40] sm:$0xff] %v581_v22  ;;  %586 = vst [vmem:[%s531_s6 + $0x60] sm:$0xff] %v585_v24 }
 0x191 PF: > { %s15_s16 = sadd.s32 1, %s936_s16   ;;  %s1160_s9 = smov %s912_s10 }
 0x192   : > { %p12_p9 = scmp.ge.s32.totalorder %s15_s16, 6   ;;  %s1161_s10 = smov %s916_s11 }
 0x193   : > { %s1162_s11 = smov %s1034_s29  ;;  %s1163_s12 = smov %s928_s14 }
 0x194   : > { %s1164_s13 = smov %s932_s15  ;;  %s1165_s14 = smov %s1168_s18 }
 0x195   : > { %s1166_s15 = smov %s1172_s19  ;;  %14 = sbr.rel (!%p12_p9) target bundleno = 5 (0x5), region = 110 }
 0x19c   :  { %604 = vsyncpa [#allocation3], 1 }
 0x19d   :  { %606 = vsyncpa [#allocation3 + $0x1], 1 }

</bundles_post_ra>
